<compile_context>
chip_gen: v5e
topology: v5e:2x2
jax: 0.10.0
libtpu: 0.0.40
codegen_flags: <defaults>
</compile_context>

<pallas_src>
import functools

import jax
import jax.numpy as jnp
from jax.experimental import pallas as pl
from jax.experimental.pallas import tpu as pltpu


_LANE = 128
_PALLAS_MIN_BYTES = 1 << 20  # below this a single fused XLA op beats kernel launch overhead


# ----------------------------- Pallas kernel ------------------------------- #

def _make_grad_invert_kernel(neg_lambda):
    """backward(g) = -lambda * g * exp(-||g||_2 over the lane axis)."""

    def kernel(g_ref, o_ref):
        g = g_ref[...]
        g32 = g.astype(jnp.float32)                                  # f32 accumulation
        norm = jnp.sqrt(jnp.sum(g32 * g32, axis=1, keepdims=True))   # (tile_n, 1) XLU reduce
        scale = neg_lambda * jnp.exp(-norm)                          # (tile_n, 1) single EUP exp
        o_ref[...] = g * scale.astype(o_ref.dtype)                   # native-dtype broadcast mul

    return kernel


# ----------------------------- tiling helpers ------------------------------ #

def _vmem_capacity_bytes():
    try:
        return int(pltpu.get_tpu_info().vmem_capacity_bytes)
    except Exception:
        return 64 << 20  # conservative default (v7x per-TensorCore VMEM)


def _sublane_multiple(itemsize):
    # (8,128) min tile for f32, (16,128) for bf16, (32,128) for int8/fp8.
    return max(8, 32 // max(int(itemsize), 1))


def _pick_tile_n(n, d, itemsize):
    """Largest sublane-multiple row tile whose double-buffered in+out blocks
    (2x in + 2x out) stay within ~half of this generation's VMEM."""
    sublane = _sublane_multiple(itemsize)
    cap = _vmem_capacity_bytes()
    pipeline_budget = min(cap // 2, 48 << 20)
    bytes_per_row = 4 * d * int(itemsize)          # 2 input bufs + 2 output bufs
    tile = pipeline_budget // max(bytes_per_row, 1)
    tile = max((tile // sublane) * sublane, sublane)
    if tile >= n:
        # Whole array fits in one block.  If there is enough work, split into
        # >= 2 programs so both v7x TensorCores get a shard (grid=(1,) would
        # leave one TC idle); this is a harmless serial split on v5e/v6e.
        if n >= 2 * sublane and n * d * int(itemsize) >= _PALLAS_MIN_BYTES:
            half = -(-((n + 1) // 2) // sublane) * sublane
            return int(min(half, n))
        return n
    return int(tile)


# ----------------------------- pallas_call wrapper ------------------------- #

def _backward_pallas(g, lambda_, tile_n=None):
    """Row-tiled, HBM-bandwidth-bound Pallas backward for 2-D (N, D) grads."""
    assert g.ndim == 2, "GradientInverterLayer backward expects a (N, D) grad"
    n, d = g.shape
    itemsize = int(jnp.dtype(g.dtype).itemsize)

    # Lane-dense output: zero-pad the feature axis to a multiple of 128.
    # Zero columns do not change the per-row L2 norm; slice back afterwards.
    d_pad = -(-d // _LANE) * _LANE
    g_in = jnp.pad(g, ((0, 0), (0, d_pad - d))) if d_pad != d else g

    if tile_n is None:
        tile_n = _pick_tile_n(n, d_pad, itemsize)
    tile_n = int(min(tile_n, n))

    cap = _vmem_capacity_bytes()
    pipeline_bytes = 4 * tile_n * d_pad * itemsize
    vmem_limit = int(max(16 << 20, min(cap - (8 << 20), pipeline_bytes + (8 << 20))))

    out = pl.pallas_call(
        _make_grad_invert_kernel(-float(lambda_)),
        out_shape=jax.ShapeDtypeStruct((n, d_pad), g.dtype),
        grid_spec=pltpu.PrefetchScalarGridSpec(
            num_scalar_prefetch=0,
            grid=(pl.cdiv(n, tile_n),),
            in_specs=[pl.BlockSpec((tile_n, d_pad), lambda i: (i, 0))],
            out_specs=pl.BlockSpec((tile_n, d_pad), lambda i: (i, 0)),
        ),
        # The incoming cotangent is dead after this op: reuse its HBM buffer.
        input_output_aliases={0: 0},
        cost_estimate=pl.CostEstimate(
            flops=3 * n * d_pad,
            transcendentals=n,
            bytes_accessed=2 * n * d_pad * itemsize),
        compiler_params=pltpu.CompilerParams(
            dimension_semantics=("parallel",),
            vmem_limit_bytes=vmem_limit),
    )(g_in)
    return out[:, :d] if d_pad != d else out


def _gri_backward(g, lambda_):
    # Tiny cotangents: one fused XLA op beats pallas_call launch + grid
    # overhead and avoids narrow (D < 128) masked-store penalties.
    if g.size * jnp.dtype(g.dtype).itemsize < _PALLAS_MIN_BYTES:
        g32 = g.astype(jnp.float32)
        norm = jnp.sqrt(jnp.sum(g32 * g32, axis=1, keepdims=True))
        return (g32 * (-float(lambda_) * jnp.exp(-norm))).astype(g.dtype)
    return _backward_pallas(g, lambda_)


# ----------------------------- custom VJP module --------------------------- #

@functools.partial(jax.custom_vjp, nondiff_argnums=(1,))
def gradient_inverter(x, lambda_=1.0):
    # Forward is a pure identity: no Pallas call, no HBM round trip.
    return x


def _gri_fwd(x, lambda_):
    return x, None


def _gri_bwd(lambda_, _res, g):
    # lambda_ is static (nondiff_argnums), so it is baked into the kernel as a
    # closure constant; changing lambda retraces/recompiles by construction.
    return (_gri_backward(g, lambda_),)


gradient_inverter.defvjp(_gri_fwd, _gri_bwd)


class GradientInverterLayer:
    """JAX/Pallas port of the PyTorch GradientInverterLayer (no parameters)."""

    def __init__(self, lambda_=1.0):
        self.lambda_ = float(lambda_)

    def __call__(self, x):
        return gradient_inverter(x, self.lambda_)


# ----------------------------------- main ----------------------------------- #

if __name__ == "__main__":
    key = jax.random.PRNGKey(0)
    k_x, k_c, k_g = jax.random.split(key, 3)
    batch, hidden = 8, 32
    x = jax.random.normal(k_x, (batch, hidden), dtype=jnp.float32)
    cotangent = jax.random.normal(k_c, (batch, hidden), dtype=jnp.float32)

    layer = GradientInverterLayer(lambda_=1.0)

    def ref_backward(g, lam):
        g32 = g.astype(jnp.float32)
        norm = jnp.linalg.norm(g32, ord=2, axis=1, keepdims=True)
        return (-lam * g32 * jnp.exp(-norm)).astype(g.dtype)

    # --- Forward: pure identity (no kernel). ---
    y = jax.block_until_ready(layer(x))
    assert y.shape == x.shape and y.dtype == x.dtype
    assert bool(jnp.array_equal(y, x)), "forward must be identity"

    # --- Backward Pallas kernel, called directly on the small shape. ---
    gi_small = jax.block_until_ready(_backward_pallas(cotangent, layer.lambda_))
    assert bool(jnp.allclose(gi_small, ref_backward(cotangent, 1.0),
                             rtol=1e-4, atol=1e-8)), \
        "backward Pallas kernel mismatch (small shape)"

    # --- Backward Pallas kernel on a bigger shape with a forced small tile:
    #     exercises grid > 1, a ragged last row-tile, and lane padding
    #     (D = 200 -> padded to 256). ---
    g_big = jax.random.normal(k_g, (300, 200), dtype=jnp.float32)
    gi_big = jax.block_until_ready(_backward_pallas(g_big, 0.5, tile_n=128))
    assert bool(jnp.allclose(gi_big, ref_backward(g_big, 0.5),
                             rtol=1e-4, atol=1e-10)), \
        "backward Pallas kernel mismatch (tiled shape)"

    # --- Backward through the custom VJP (small shape -> fused jnp fallback). ---
    def loss(inp):
        return jnp.sum(layer(inp) * cotangent)

    grad_x = jax.block_until_ready(jax.grad(loss)(x))
    assert bool(jnp.allclose(grad_x, ref_backward(cotangent, 1.0),
                             rtol=1e-4, atol=1e-8)), \
        "custom VJP backward mismatch vs reference"

    # TODO(synk): inputs with rank != 2 are not supported (the original PyTorch
    # backward only broadcasts correctly for 2-D (N, D) tensors anyway).
    print("KERNEL_OK")
</pallas_src>

<mosaic_0001>
module attributes {stable_mosaic.version = 11 : i64} {
  func.func @kernel(%arg0: i32, %arg1: memref<8x128xf32, #tpu.memory_space<vmem>>, %arg2: memref<8x128xf32, #tpu.memory_space<vmem>>) attributes {dimension_semantics = [#tpu.dimension_semantics<parallel>], iteration_bounds = array<i64: 1>, scalar_prefetch = 0 : i64, scratch_operands = 0 : i64, tpu.core_type = #tpu.core_type<tc>, window_params = [{transform_indices = @transform_0, window_bounds = array<i64: 8, 128>}, {transform_indices = @transform_1, window_bounds = array<i64: 8, 128>}]} {
    %c0 = arith.constant 0 : index
    %c0_0 = arith.constant 0 : index
    %0 = vector.load %arg1[%c0, %c0_0] : memref<8x128xf32, #tpu.memory_space<vmem>>, vector<8x128xf32>
    %1 = arith.mulf %0, %0 : vector<8x128xf32>
    %cst = arith.constant dense<0.000000e+00> : vector<8xf32>
    %2 = vector.multi_reduction <add>, %1, %cst [1] : vector<8x128xf32> to vector<8xf32>
    %3 = vector.shape_cast %2 : vector<8xf32> to vector<8x1xf32>
    %4 = math.sqrt %3 : vector<8x1xf32>
    %cst_1 = arith.constant 0.000000e+00 : f32
    %5 = vector.broadcast %cst_1 : f32 to vector<8x1xf32>
    %6 = arith.subf %5, %4 : vector<8x1xf32>
    %7 = math.exp %6 : vector<8x1xf32>
    %cst_2 = arith.constant -1.000000e+00 : f32
    %8 = vector.broadcast %cst_2 : f32 to vector<8x1xf32>
    %9 = arith.mulf %8, %7 : vector<8x1xf32>
    %10 = vector.broadcast %9 : vector<8x1xf32> to vector<8x128xf32>
    %11 = arith.mulf %0, %10 : vector<8x128xf32>
    %c0_3 = arith.constant 0 : index
    %c0_4 = arith.constant 0 : index
    %12 = vector.load %arg2[%c0_3, %c0_4] : memref<8x128xf32, #tpu.memory_space<vmem>>, vector<8x128xf32>
    tpu.vector_store %arg2[%c0_3, %c0_4], %11 {strides = array<i32>} : memref<8x128xf32, #tpu.memory_space<vmem>>, vector<8x128xf32>,
    return
  }
  func.func @transform_0(%arg0: i32) -> (i32, i32) {
    %c0_i32 = arith.constant 0 : i32
    %c0_i32_0 = arith.constant 0 : i32
    return %arg0, %c0_i32 : i32, i32
  }
  func.func @transform_1(%arg0: i32) -> (i32, i32) {
    %c0_i32 = arith.constant 0 : i32
    %c0_i32_0 = arith.constant 0 : i32
    return %arg0, %c0_i32 : i32, i32
  }
}

</mosaic_0001>

<bundles_post_ra>
// kernel: tpu_custom_call.1
= control target key start
LH: loop header
LB: loop body
LE: loop exit
PB: predicated region body
PF: predicated region fallthrough
CT: control target
= control target key end

     0   :  { %6 = vsyncpa [#allocation3], 0  ;;  %s138_s0 = inlined_call_operand.hbm [shape: f32[8,128], index: 0, kind: input, shape index: {}, may-alias: {0,1}]   ;;  %s139_s1 = inlined_call_operand.hbm [shape: f32[8,128], index: 1, kind: output, shape index: {}, may-alias: {0,1}]  }
   0x1   :  { %7 = vsyncpa [#allocation4], 0  ;;  %s13_s8 = sshll.u32 %s138_s0, 4  ;;  %s120_s9 = smov [#allocation2]   ;;  %s14_s8 = int_to_ptr.hbm [resolvable:$true] %s13_s8 }
   0x2   :  { %s15_s10 = sshll.u32 %s120_s9, 4  ;;  %s16_s10 = int_to_ptr.vmem [resolvable:$true] %s15_s10 }
   0x3   :  { %18 = dma.hbm_to_vmem [thread:$0]  %s14_s8, 128, %s16_s10, [#allocation3]  }
   0x4   :  { %116 = dma.done.wait [#allocation3], 128  }
   0x5   :  { %117 = vsyncadd [#allocation3], 4294967168  ;;  %v23_v0 = vld [vmem:[#allocation2] sm:$0xff]  ;;  %s121_s0 = smov [#allocation5]   ;;  %s52_s14 = sshll.u32 %s139_s1, 4  ;;  %s53_s14 = int_to_ptr.hbm [resolvable:$true] %s52_s14 }
   0x6   :  { %v24_v1 = vmul.f32 %v23_v0, %v23_v0  ;;  %s50_s11 = sshll.u32 %s121_s0, 4  ;;  %s51_s11 = int_to_ptr.vmem [resolvable:$true] %s50_s11 }
   0x8   :  { %25 = vadd.xlane.f32.xlu0 %v24_v1 }
  0x7b   :  { %v26_v2 = vpop.xlane.xlu0 %25 }
  0x7c   :  { %64 = vrsqrt.f32 %v26_v2  ;;  %vm34_vm0 = vcmp.eq.f32.partialorder %v26_v2, inf  ;;  %v37_v10 = vand.u32 2147483648, %v26_v2  ;;  %vm36_vm1 = vcmp.eq.f32.partialorder %v26_v2, 0.0 }
  0x82   :  { %v65_v3 = vpop.eup %64 }
  0x83   :  { %v28_v4 = vmul.f32 %v65_v3, %v26_v2 }
  0x85   :  { %v29_v5 = vmul.f32 %v65_v3, %v28_v4 }
  0x87   :  { %v30_v6 = vmul.f32 0.5, %v29_v5 }
  0x89   :  { %v31_v7 = vsub.f32 1.5, %v30_v6 }
  0x8b   :  { %v32_v8 = vmul.f32 %v65_v3, %v31_v7 }
  0x8d   :  { %v33_v9 = vmul.f32 %v32_v8, %v26_v2 }
  0x8f   :  { %v35_v11 = vsel %vm34_vm0, %v26_v2, %v33_v9 }
  0x90   :  { %v38_v12 = vsel %vm36_vm1, %v37_v10, %v35_v11 }
  0x91   :  { %v39_v13 = vsub.f32 0.0, %v38_v12 }
  0x93   :  { %v40_v14 = vmul.f32 1.442695, %v39_v13 }
  0x95   :  { %66 = vpow2.f32 %v40_v14 }
  0x9b   :  { %v67_v15 = vpop.eup %66 }
  0x9c   :  { %v42_v16 = vmul.f32 -1.0, %v67_v15 }
  0x9e   :  { %v43_v17 = vmul.f32 %v42_v16, %v23_v0 }
  0xa0   :  { %44 = vst [vmem:[#allocation5] sm:$0xff] %v43_v17 }
  0xa1   :  { %55 = dma.vmem_to_hbm [thread:$0]  %s51_s11, 128, %s53_s14, [#allocation4]  }
  0xa2   :  { %118 = dma.done.wait [#allocation4], 128  }
  0xa3   :  { %119 = vsyncadd [#allocation4], 4294967168 }
  0xa4   :  { %60 = vsyncpa [#allocation3], 1 }
  0xa5   :  { %61 = vsyncpa [#allocation4], 1 }

</bundles_post_ra>
